<compile_context>
chip_gen: v6e
topology: v6e:2x2x1
jax: 0.10.0
libtpu: 0.0.40
codegen_flags: <defaults>
</compile_context>

<pallas_src>
import functools

import jax
import jax.numpy as jnp
from jax.experimental import pallas as pl
from jax.experimental.pallas import tpu as pltpu

# ---- quantizer configuration (QuantDescriptor defaults) --------------------
NUM_BITS = 8
UNSIGNED = False
NARROW_RANGE = True

MAX_BOUND = float((2 ** (NUM_BITS - 1 + int(UNSIGNED))) - 1)          # 127
if UNSIGNED:
    MIN_BOUND = 0.0
elif NARROW_RANGE:
    MIN_BOUND = -MAX_BOUND                                            # -127
else:
    MIN_BOUND = -MAX_BOUND - 1.0
EPSILON = 1.0 / (1 << 24)

WIDTH = 1024                       # lane-dense last dim (8 full vregs wide)
MAX_BLOCK_ROWS = 1024              # (1024, 1024) f32 block = 4 MiB per buffer
FUSED_MAX_ELEMS = 1 << 20          # <= 1M elements -> fused VMEM-resident path
VMEM_LIMIT_BYTES = 48 * 1024 * 1024  # explicit scoped-VMEM limit (v5e default 16 MiB)


# ---- kernel 0: fused VMEM-resident fake quant (small/medium tensors) --------
def _fused_quant_kernel(x_ref, o_ref):
    x = x_ref[...].astype(jnp.float32)
    amax = jnp.max(jnp.abs(x))
    is_zero = amax <= EPSILON
    scale_mul = jnp.where(is_zero, jnp.float32(0.0), MAX_BOUND / amax)
    scale_div = jnp.where(is_zero, jnp.float32(1.0), MAX_BOUND / amax)
    q = jnp.clip(jnp.round(x * scale_mul), MIN_BOUND, MAX_BOUND)
    o_ref[...] = (q / scale_div).astype(o_ref.dtype)


# ---- kernel 1: per-block partial |x| max (parallel across blocks) ------------
def _amax_partial_kernel(x_ref, part_ref, *, valid_rows, block_rows):
    xa = jnp.abs(x_ref[...].astype(jnp.float32))
    if valid_rows is not None:
        # Last block is partial: rows >= valid_rows hold stale garbage from the
        # clipped DMA; zero them out before the max (zeros can't raise |x| max).
        row = (jax.lax.broadcasted_iota(jnp.int32, (block_rows, 1), 0)
               + pl.program_id(0) * block_rows)
        xa = jnp.where(row < valid_rows, xa, 0.0)
    part_ref[...] = jnp.full(part_ref.shape, jnp.max(xa), dtype=part_ref.dtype)


# ---- kernel 2: fake quantize with precomputed scales read from SMEM ----------
def _fake_quant_kernel(scales_ref, x_ref, o_ref):
    scale_mul = scales_ref[0]          # 127/amax (0 if amax <= 2^-24)
    scale_div = scales_ref[1]          # 127/amax (1 if amax <= 2^-24)
    x = x_ref[...].astype(jnp.float32)
    q = jnp.clip(jnp.round(x * scale_mul), MIN_BOUND, MAX_BOUND)
    o_ref[...] = (q / scale_div).astype(o_ref.dtype)


# ---- two-pass path for tensors too large to sit in VMEM ----------------------
def _two_pass_quant(x2d, rows, out_dtype, max_block_rows):
    # Block equals the full row dim (any size is legal then) or a multiple of 32
    # (satisfies f32/bf16/int8 sublane tiling).
    block_rows = rows if rows <= max_block_rows else max_block_rows
    n_blocks = pl.cdiv(rows, block_rows)
    ragged = (rows % block_rows) != 0

    amax_kernel = functools.partial(
        _amax_partial_kernel,
        valid_rows=rows if ragged else None,
        block_rows=block_rows)

    # TODO(synk): "parallel" may not shard the block axis across v7x's two
    # TensorCores; verify and switch to pltpu.CORE_PARALLEL / core_map if not.
    partials = pl.pallas_call(
        amax_kernel,
        out_shape=jax.ShapeDtypeStruct((n_blocks * 8, 128), jnp.float32),
        grid_spec=pltpu.PrefetchScalarGridSpec(
            num_scalar_prefetch=0,
            grid=(n_blocks,),
            in_specs=[pl.BlockSpec((block_rows, WIDTH), lambda i: (i, 0))],
            out_specs=pl.BlockSpec((8, 128), lambda i: (i, 0)),
        ),
        compiler_params=pltpu.CompilerParams(
            dimension_semantics=("parallel",),
            vmem_limit_bytes=VMEM_LIMIT_BYTES),
    )(x2d)
    amax = jnp.max(partials)   # tiny cross-block combine in XLA (n_blocks values)

    # Scale math done once (mirrors _tensor_quant's zero-amax guard).
    is_zero = amax <= EPSILON
    scale = MAX_BOUND / amax
    scale_mul = jnp.where(is_zero, jnp.float32(0.0), scale)
    scale_div = jnp.where(is_zero, jnp.float32(1.0), scale)
    scales = jnp.stack([scale_mul, scale_div]).astype(jnp.float32)

    out2d = pl.pallas_call(
        _fake_quant_kernel,
        out_shape=jax.ShapeDtypeStruct((rows, WIDTH), out_dtype),
        grid_spec=pltpu.PrefetchScalarGridSpec(
            num_scalar_prefetch=0,
            grid=(n_blocks,),
            in_specs=[
                pl.BlockSpec(memory_space=pltpu.MemorySpace.SMEM),    # scales (2,)
                pl.BlockSpec((block_rows, WIDTH), lambda i: (i, 0)),  # x block
            ],
            out_specs=pl.BlockSpec((block_rows, WIDTH), lambda i: (i, 0)),
        ),
        compiler_params=pltpu.CompilerParams(
            dimension_semantics=("parallel",),
            vmem_limit_bytes=VMEM_LIMIT_BYTES),
    )(scales, x2d)
    return out2d


# ---- wrapper ------------------------------------------------------------------
@functools.partial(
    jax.jit,
    static_argnames=("disabled", "if_quant", "fused_max_elems", "max_block_rows"))
def tensor_quantizer_forward(x, *, disabled=False, if_quant=True,
                             fused_max_elems=FUSED_MAX_ELEMS,
                             max_block_rows=MAX_BLOCK_ROWS):
    """Pallas implementation of TensorQuantizer.forward (default descriptor)."""
    if disabled or not if_quant:
        return x

    orig_shape = x.shape
    orig_dtype = x.dtype
    total = x.size
    if total == 0:
        return x

    flat = x.reshape(-1)
    pad = (-total) % WIDTH
    if pad:
        # TODO(synk): for large ragged totals this XLA pad (and the matching
        # output slice) is an extra full HBM read+write; an in-kernel
        # lane-masked tail block would remove it.
        flat = jnp.pad(flat, (0, pad))
    rows = (total + pad) // WIDTH
    x2d = flat.reshape(rows, WIDTH)     # lane-dense slab (free reshape when pad==0)

    if total <= fused_max_elems:
        # Fused path: whole slab resident in VMEM, one read + one write of HBM.
        out2d = pl.pallas_call(
            _fused_quant_kernel,
            out_shape=jax.ShapeDtypeStruct((rows, WIDTH), orig_dtype),
            compiler_params=pltpu.CompilerParams(
                vmem_limit_bytes=VMEM_LIMIT_BYTES),
        )(x2d)
    else:
        out2d = _two_pass_quant(x2d, rows, orig_dtype, max_block_rows)

    out = out2d.reshape(-1)
    if pad:
        out = out[:total]
    return out.reshape(orig_shape)


# ---- pure-JAX reference (mirrors fake_tensor_quant) -----------------------------
def _reference(x):
    xf = x.astype(jnp.float32)
    amax = jnp.max(jnp.abs(xf))
    is_zero = amax <= EPSILON
    scale_mul = jnp.where(is_zero, 0.0, MAX_BOUND / amax)
    scale_div = jnp.where(is_zero, 1.0, MAX_BOUND / amax)
    q = jnp.clip(jnp.round(xf * scale_mul), MIN_BOUND, MAX_BOUND)
    return (q / scale_div).astype(x.dtype)


if __name__ == "__main__":
    key = jax.random.PRNGKey(0)
    k1, k2, k3, k4 = jax.random.split(key, 4)

    # layout: NCHW, as the PyTorch module would receive from a conv stack.
    x = jax.random.normal(k1, (2, 4, 16, 16), dtype=jnp.float32) * 3.0
    out = jax.block_until_ready(tensor_quantizer_forward(x))
    ref = _reference(x)
    assert out.shape == x.shape and out.dtype == x.dtype
    assert jnp.allclose(out, ref, atol=1e-5, rtol=1e-6), "mismatch vs reference"

    # ragged size (exercises the WIDTH-padding fallback in the fused path)
    x2 = jax.random.normal(k2, (3, 5, 7, 11), dtype=jnp.float32)
    out2 = jax.block_until_ready(tensor_quantizer_forward(x2))
    assert jnp.allclose(out2, _reference(x2), atol=1e-5, rtol=1e-6)

    # all-zero tensor exercises the amax <= 2^-24 guard
    x3 = jnp.zeros((8, 128), dtype=jnp.float32)
    out3 = jax.block_until_ready(tensor_quantizer_forward(x3))
    assert jnp.allclose(out3, _reference(x3), atol=1e-5, rtol=1e-6)

    # bf16 input stays bf16 (native-dtype read traffic)
    xb = (jax.random.normal(k3, (2, 4, 16, 16), dtype=jnp.float32) * 2.0
          ).astype(jnp.bfloat16)
    outb = jax.block_until_ready(tensor_quantizer_forward(xb))
    assert outb.dtype == jnp.bfloat16
    assert jnp.allclose(outb.astype(jnp.float32),
                        _reference(xb).astype(jnp.float32),
                        atol=1e-2, rtol=1e-2)

    # force the large-tensor two-pass path on a small shape: multi-block grid,
    # partial (masked) last amax block, SMEM-carried scales, clipped writeback.
    x4 = jax.random.normal(k4, (4, 8, 32, 36), dtype=jnp.float32)  # rows = 36
    out4 = jax.block_until_ready(
        tensor_quantizer_forward(x4, fused_max_elems=0, max_block_rows=16))
    assert jnp.allclose(out4, _reference(x4), atol=1e-5, rtol=1e-6)

    # disabled path bypasses quantization entirely
    assert jnp.array_equal(tensor_quantizer_forward(x, disabled=True), x)

    print("KERNEL_OK")
</pallas_src>

<mosaic_0001>
module attributes {stable_mosaic.version = 11 : i64} {
  func.func @_fused_quant_kernel(%arg0: memref<2x1024xf32, #tpu.memory_space<vmem>>, %arg1: memref<2x1024xf32, #tpu.memory_space<vmem>>) attributes {dimension_semantics = [], scalar_prefetch = 0 : i64, scratch_operands = 0 : i64, tpu.core_type = #tpu.core_type<tc>} {
    %c0 = arith.constant 0 : index
    %c0_0 = arith.constant 0 : index
    %0 = vector.load %arg0[%c0, %c0_0] : memref<2x1024xf32, #tpu.memory_space<vmem>>, vector<2x1024xf32>
    %1 = math.absf %0 : vector<2x1024xf32>
    %2 = vector.shape_cast %1 : vector<2x1024xf32> to vector<1x2x1024xf32>
    %cst = arith.constant dense<0xFF800000> : vector<1xf32>
    %3 = vector.multi_reduction <maximumf>, %2, %cst [1, 2] : vector<1x2x1024xf32> to vector<1xf32>
    %4 = vector.shape_cast %3 : vector<1xf32> to vector<1x1x1xf32>
    %5 = vector.extract %4[0, 0, 0] : f32 from vector<1x1x1xf32>
    %cst_1 = arith.constant 5.96046448E-8 : f32
    %6 = arith.cmpf ole, %5, %cst_1 : f32
    %cst_2 = arith.constant 1.270000e+02 : f32
    %7 = arith.divf %cst_2, %5 : f32
    %cst_3 = arith.constant 0.000000e+00 : f32
    %8 = arith.select %6, %cst_3, %7 : f32
    %cst_4 = arith.constant 1.270000e+02 : f32
    %9 = arith.divf %cst_4, %5 : f32
    %cst_5 = arith.constant 1.000000e+00 : f32
    %10 = arith.select %6, %cst_5, %9 : f32
    %11 = vector.broadcast %8 : f32 to vector<2x1024xf32>
    %12 = arith.mulf %0, %11 : vector<2x1024xf32>
    %13 = math.roundeven %12 : vector<2x1024xf32>
    %cst_6 = arith.constant -1.270000e+02 : f32
    %cst_7 = arith.constant 1.270000e+02 : f32
    %14 = vector.broadcast %cst_6 : f32 to vector<2x1024xf32>
    %15 = arith.maximumf %14, %13 : vector<2x1024xf32>
    %16 = vector.broadcast %cst_7 : f32 to vector<2x1024xf32>
    %17 = arith.minimumf %16, %15 : vector<2x1024xf32>
    %18 = vector.broadcast %10 : f32 to vector<2x1024xf32>
    %19 = arith.divf %17, %18 : vector<2x1024xf32>
    %c0_8 = arith.constant 0 : index
    %c0_9 = arith.constant 0 : index
    %20 = vector.load %arg1[%c0_8, %c0_9] : memref<2x1024xf32, #tpu.memory_space<vmem>>, vector<2x1024xf32>
    tpu.vector_store %arg1[%c0_8, %c0_9], %19 {strides = array<i32>} : memref<2x1024xf32, #tpu.memory_space<vmem>>, vector<2x1024xf32>,
    return
  }
}

</mosaic_0001>

<bundles_post_ra>
// kernel: tensor_quantizer_forward.1
= control target key start
LH: loop header
LB: loop body
LE: loop exit
PB: predicated region body
PF: predicated region fallthrough
CT: control target
= control target key end

     0   :  { %v18_v0 = vlaneseq  ;;  %v134_v3 = vmov 1983009808   ;;  %vm56_vm0 = vcmask 1041408   ;;  %s165_s0 = inlined_call_operand.vmem [shape: f32[2,1024], index: 0, kind: input, shape index: {}]   ;;  %s166_s1 = inlined_call_operand.vmem [shape: f32[2,1024], index: 1, kind: output, shape index: {}]  }
   0x1   :  { %v8_v1 = vld [vmem:[%s165_s0] sm:$0xff]  ;;  %v9_v2 = vld [vmem:[%s165_s0 + $0x8] sm:$0xff]  ;;  %v16_v4 = vunpack.c.l.s4 %v134_v3 }
   0x2   :  { %v10_v5 = vand.u32 2147483647, %v8_v1  ;;  %v11_v6 = vand.u32 2147483647, %v9_v2  ;;  %v19_v7 = vshrl.u32 %v18_v0, 7 }
   0x3   :  { %v17_v8 = vunpack.c.0.s8 %v16_v4 }
   0x4   :  { %v14_v9 = vcombine.high %v10_v5, %v10_v5  ;;  %v31_v10 = vcombine.high %v11_v6, %v11_v6 }
   0x5   :  { %v20_v11 = vsub.s32 %v17_v8, %v19_v7 }
   0x7   :  { %v21_v12 = vrot.slane %v10_v5, %v20_v11  ;;  %v28_v13 = vrot.slane %v14_v9, %v20_v11  ;;  %v38_v14 = vrot.slane %v11_v6, %v20_v11  ;;  %v45_v15 = vrot.slane %v31_v10, %v20_v11 }
   0x9   :  { %v29_v16 = vcombine.high %v21_v12, %v21_v12  ;;  %v30_v17 = vcombine.high %v28_v13, %v28_v13  ;;  %v46_v18 = vcombine.high %v38_v14, %v38_v14  ;;  %v47_v19 = vcombine.high %v45_v15, %v45_v15 }
   0xa   :  { %v57_v20 = vsel %vm56_vm0, %v21_v12, -inf  ;;  %v59_v21 = vsel %vm56_vm0, %v28_v13, -inf  ;;  %v61_v22 = vsel %vm56_vm0, %v38_v14, -inf  ;;  %v65_v23 = vsel %vm56_vm0, %v45_v15, -inf }
   0xb   :  { %v58_v24 = vsel %vm56_vm0, %v29_v16, -inf  ;;  %v60_v25 = vsel %vm56_vm0, %v30_v17, -inf  ;;  %v62_v26 = vmax.f32 %v57_v20, %v61_v22  ;;  %v63_v27 = vsel %vm56_vm0, %v46_v18, -inf }
   0xc   :  { %v64_v28 = vmax.f32 %v58_v24, %v63_v27  ;;  %v66_v29 = vmax.f32 %v59_v21, %v65_v23  ;;  %v67_v30 = vsel %vm56_vm0, %v47_v19, -inf }
   0xd   :  { %v68_v31 = vmax.f32 %v60_v25, %v67_v30 }
   0xe   :  { %v69_v32 = vmax.f32 %v62_v26, %v64_v28 }
   0xf   :  { %v70_v33 = vmax.f32 %v66_v29, %v68_v31 }
  0x11   :  { %v71_v34 = vmax.f32 %v69_v32, %v70_v33 }
  0x13   :  { %72 = vmax.xlane.f32.xlu0 %v71_v34 }
  0x9c   :  { %v73_v35 = vpop.xlane.xlu0 %72 }
  0x9d   :  { %v74_v36 = vrot.slane %v73_v35, 4 }
  0x9f   :  { %v75_v37 = vmax.f32 %v73_v35, %v74_v36 }
  0xa1   :  { %v76_v38 = vrot.slane %v75_v37, 2 }
  0xa3   :  { %v77_v39 = vmax.f32 %v75_v37, %v76_v38 }
  0xa5   :  { %v78_v40 = vrot.slane %v77_v39, 1 }
  0xa7   :  { %v79_v41 = vmax.f32 %v77_v39, %v78_v40 }
  0xa9   :  { %109 = vpush %v79_v41 }
  0xda   :  { %s110_s0 = spop %109 }
  0xdb   :  { %v82_v42 = vstv %s110_s0  ;;  %p81_p0 = scmp.le.f32.partialorder %s110_s0, 5.9604645e-08 }
  0xdc   :  { %130 = vrcp.f32 %v82_v42 }
  0xe9   :  { %v131_v43 = vpop.eup %130 }
  0xea   :  { %111 = vpush %v131_v43 }
 0x11b   :  { %s112_s10 = spop %111 }
 0x11c   :  { %s85_s11 = smul.f32 127.0, %s112_s10 }
 0x11e   :  { %s86_s12 = scalar_select %p81_p0, 0.0, %s85_s11 }
 0x11f   :  { %s168_s11 = smov (%p81_p0, %s85_s11), 1.0 }
 0x120   :  { %v88_v44 = vstv %s86_s12  ;;  %v97_v47 = vstv %s168_s11 }
 0x121   :  { %v89_v45 = vmul.f32 %v88_v44, %v8_v1  ;;  %v90_v46 = vmul.f32 %v88_v44, %v9_v2  ;;  %132 = vrcp.f32 %v97_v47 }
 0x123   :  { %v115_v48 = vcvt.f32.s32 %v89_v45  ;;  %v123_v49 = vcvt.f32.s32 %v90_v46  ;;  %v113_v51 = vand.u32 2147483647, %v89_v45  ;;  %v118_v54 = vand.u32 2147483648, %v89_v45 }
 0x124   :  { %v121_v55 = vand.u32 2147483647, %v90_v46  ;;  %v126_v57 = vand.u32 2147483648, %v90_v46 }
 0x125   :  { %v116_v50 = vcvt.s32.f32 %v115_v48  ;;  %v124_v52 = vcvt.s32.f32 %v123_v49  ;;  %vm114_vm1 = vcmp.lt.f32.partialorder %v113_v51, 8388608.0 }
 0x126   :  { %vm122_vm2 = vcmp.lt.f32.partialorder %v121_v55, 8388608.0 }
 0x127   :  { %v117_v53 = vand.u32 2147483647, %v116_v50  ;;  %v125_v56 = vand.u32 2147483647, %v124_v52 }
 0x129   :  { %v119_v58 = vor.u32 %v118_v54, %v117_v53  ;;  %v127_v59 = vor.u32 %v126_v57, %v125_v56 }
 0x12b   :  { %v120_v60 = vsel %vm114_vm1, %v119_v58, %v89_v45  ;;  %v128_v61 = vsel %vm122_vm2, %v127_v59, %v90_v46 }
 0x12c   :  { %v107_v62 = vclamps-f32 %v120_v60, 127.0  ;;  %v108_v63 = vclamps-f32 %v128_v61, 127.0 }
 0x12e   :  { %v133_v0 = vpop.eup %132 }
 0x12f   :  { %v99_v1 = vmul.f32 %v133_v0, %v107_v62  ;;  %v100_v2 = vmul.f32 %v133_v0, %v108_v63 }
 0x131   :  { %101 = vst [vmem:[%s166_s1] sm:$0xff] %v99_v1  ;;  %102 = vst [vmem:[%s166_s1 + $0x8] sm:$0xff] %v100_v2 }

</bundles_post_ra>
